<compile_context>
chip_gen: v5e
topology: v5e:2x2
jax: 0.10.0
libtpu: 0.0.40
codegen_flags: <defaults>
</compile_context>

<pallas_src>
import numpy as np
import jax
import jax.numpy as jnp
from jax.experimental import pallas as pl
from jax.experimental.pallas import tpu as pltpu


def feature_embedding_kernel(x_ref, w_ref, b_ref, pe_ref, o_ref):
    """One (L_tile, Bt*D_tile) output block: im2col matmul + bias + ReLU + PE.

    x_ref : (Bt, L_tile, K*Cin)   im2col rows (built wrapper-side)
    w_ref : (K*Cin, D_tile)       im2col-reshaped conv weights
    b_ref : (1, D_tile)           conv bias slice
    pe_ref: (L_tile, D_tile)      positional-encoding slice
    o_ref : (L_tile, Bt*D_tile)   block of the flattened (L, B*D) output
    Fast path (Bt == 1): a single MXU dot and one dense, unmasked block store.
    """
    Bt = x_ref.shape[0]
    Dt = w_ref.shape[1]
    if Bt == 1:
        acc = jnp.dot(x_ref[0], w_ref[...], preferred_element_type=jnp.float32)
        acc = jnp.maximum(acc + b_ref[...], 0.0) + pe_ref[...]
        o_ref[...] = acc.astype(o_ref.dtype)
    else:
        # Small-D fallback: whole batch handled in one block (Bt static & small).
        for b in range(Bt):
            acc = jnp.dot(x_ref[b], w_ref[...], preferred_element_type=jnp.float32)
            acc = jnp.maximum(acc + b_ref[...], 0.0) + pe_ref[...]
            o_ref[:, b * Dt:(b + 1) * Dt] = acc.astype(o_ref.dtype)


def make_positional_encoding(d_model, max_len=5000):
    # Mirrors PositionalEncoding.__init__ (pe[:, 0::2]=sin, pe[:, 1::2]=cos).
    position = jnp.arange(max_len, dtype=jnp.float32)[:, None]
    div_term = jnp.exp(jnp.arange(0, d_model, 2, dtype=jnp.float32)
                       * (-np.log(10000.0) / d_model))
    pe = jnp.zeros((max_len, d_model), dtype=jnp.float32)
    pe = pe.at[:, 0::2].set(jnp.sin(position * div_term))
    pe = pe.at[:, 1::2].set(jnp.cos(position * div_term))
    return pe


def _ceil_to(x, m):
    return -(-x // m) * m


def _block_bytes(l_tile, d_tile, bt, kcin, itemsize=4):
    # Per-grid-step VMEM block footprint *including* lane/sublane padding.
    x_blk = bt * l_tile * _ceil_to(kcin, 128)
    w_blk = _ceil_to(kcin, 8) * _ceil_to(d_tile, 128)
    b_blk = 8 * _ceil_to(d_tile, 128)
    pe_blk = l_tile * _ceil_to(d_tile, 128)
    o_blk = l_tile * _ceil_to(bt * d_tile, 128)
    return itemsize * (x_blk + w_blk + b_blk + pe_blk + o_blk)


def feature_embedding(x_ncl, weight, bias, pe_table):
    """x_ncl: (B, Cin, L); weight: (D, Cin, K) [PyTorch Conv1d layout]; bias: (D,).

    Returns (L, B, D), matching FeatureEmbedding.forward (conv -> relu -> permute -> +pe).
    """
    B, Cin, L = x_ncl.shape
    D, _, K = weight.shape
    assert K % 2 == 1, "only odd kernel_size matches PyTorch output length with padding=K//2"
    assert L <= pe_table.shape[0], "sequence length exceeds PositionalEncoding max_len"
    pad = K // 2
    KCin = K * Cin

    # --- generation-aware VMEM budget (v5e/v6e: 128 MiB, v7x: 64 MiB physical) ---
    try:
        vmem_cap = int(pltpu.get_tpu_info().vmem_capacity_bytes)
    except Exception:
        vmem_cap = 64 << 20                       # conservative (v7x-sized) fallback
    try:
        kind = jax.devices()[0].device_kind.lower()
    except Exception:
        kind = ""
    budget = min(int(vmem_cap * 0.80), 100 << 20)  # headroom for compiler scratch

    # --- tile selection -----------------------------------------------------------
    if D % 128 == 0:
        # Fast path: batch becomes a grid axis -> dense lane-aligned output blocks.
        d_cands = (128, 256) if "v5" in kind else (256, 128)   # v5e MXU is 128-wide
        D_tile = next(c for c in d_cands if D % c == 0)
        Bt = 1
    else:
        # Small-D fallback: keep the whole flattened B*D as one block so the
        # (8,128)/full-dim BlockSpec rule is satisfied.
        # TODO(synk): pad D up to 128 in-kernel to hit the fast path for small models.
        D_tile = D
        Bt = B
    n_d = D // D_tile
    n_b = B // Bt

    l_cands = [c for c in (1024, 512, 256, 128, 64, 32, 16, 8) if L % c == 0] or [L]
    L_tile = next((c for c in l_cands
                   if 2 * _block_bytes(c, D_tile, Bt, KCin) <= budget),
                  l_cands[-1])
    n_l = L // L_tile
    # v7x has 2 TensorCores sharded over "parallel" axes: keep >= 2 grid steps.
    while n_l * n_d * n_b < 2 and L_tile >= 16 and (L_tile // 2) % 8 == 0:
        L_tile //= 2
        n_l = L // L_tile

    # --- wrapper-side prep (input is the smallest tensor involved) -----------------
    # im2col hoisted out of the kernel: x_im2col[b, t, k*Cin + c] = x_pad[b, t+k, c].
    x_pad = jnp.pad(jnp.transpose(x_ncl, (0, 2, 1)),           # (B, L, Cin)
                    ((0, 0), (pad, pad), (0, 0)))              # (B, L+K-1, Cin)
    x_im2col = jnp.concatenate([x_pad[:, k:k + L, :] for k in range(K)],
                               axis=-1)                        # (B, L, K*Cin)
    w2 = jnp.transpose(weight, (2, 1, 0)).reshape(KCin, D)     # im2col weights
    b_2d = bias.reshape(1, D)
    pe = pe_table[:L]                                          # (L, D)

    needed = 2 * _block_bytes(L_tile, D_tile, Bt, KCin)        # double-buffered blocks
    vmem_limit = int(min(max(needed + (4 << 20), 16 << 20), budget))

    out_flat = pl.pallas_call(
        feature_embedding_kernel,
        out_shape=jax.ShapeDtypeStruct((L, B * D), x_ncl.dtype),
        grid=(n_l, n_d, n_b),   # b innermost: weight/bias/PE blocks reused across batch
        in_specs=[
            pl.BlockSpec((Bt, L_tile, KCin), lambda l, d, b: (b, l, 0)),
            pl.BlockSpec((KCin, D_tile), lambda l, d, b: (0, d)),
            pl.BlockSpec((1, D_tile), lambda l, d, b: (0, d)),
            pl.BlockSpec((L_tile, D_tile), lambda l, d, b: (l, d)),
        ],
        # Dense (L_tile, Bt*D_tile) output blocks of the flattened (L, B*D) array.
        out_specs=pl.BlockSpec((L_tile, Bt * D_tile),
                               lambda l, d, b: (l, b * n_d + d)),
        compiler_params=pltpu.CompilerParams(
            dimension_semantics=("parallel", "parallel", "parallel"),
            vmem_limit_bytes=vmem_limit),
    )(x_im2col, w2, b_2d, pe)

    # Free view back to (L, B, D): column b*D + j of the flat output is (batch b, dim j).
    return out_flat.reshape(L, B, D)


def _reference(x_ncl, weight, bias, pe_table):
    # Plain-JAX reference of the PyTorch forward for validation.
    y = jax.lax.conv_general_dilated(
        x_ncl, weight, window_strides=(1,), padding=((weight.shape[2] // 2,) * 2,),
        dimension_numbers=("NCH", "OIH", "NCH"))
    y = y + bias[None, :, None]
    y = jnp.maximum(y, 0.0)
    y = jnp.transpose(y, (2, 0, 1))                            # (L, B, D)
    return y + pe_table[: y.shape[0]][:, None, :]


if __name__ == "__main__":
    B, Cin, L, D, K = 2, 4, 16, 32, 3
    key = jax.random.PRNGKey(0)
    kx, kw, kb = jax.random.split(key, 3)

    x = jax.random.normal(kx, (B, Cin, L), dtype=jnp.float32)
    weight = jax.random.normal(kw, (D, Cin, K), dtype=jnp.float32) * 0.1
    bias = jax.random.normal(kb, (D,), dtype=jnp.float32) * 0.1
    pe_table = make_positional_encoding(D, max_len=5000)

    out = feature_embedding(x, weight, bias, pe_table)
    out = jax.block_until_ready(out)

    ref = jax.block_until_ready(_reference(x, weight, bias, pe_table))
    assert out.shape == (L, B, D), out.shape
    np.testing.assert_allclose(np.asarray(out), np.asarray(ref), rtol=1e-5, atol=1e-5)

    print("KERNEL_OK")
</pallas_src>

<mosaic_0001>
module attributes {stable_mosaic.version = 11 : i64} {
  func.func @feature_embedding_kernel(%arg0: i32, %arg1: i32, %arg2: i32, %arg3: memref<2x8x12xf32, #tpu.memory_space<vmem>>, %arg4: memref<12x32xf32, #tpu.memory_space<vmem>>, %arg5: memref<1x32xf32, #tpu.memory_space<vmem>>, %arg6: memref<8x32xf32, #tpu.memory_space<vmem>>, %arg7: memref<8x64xf32, #tpu.memory_space<vmem>>) attributes {dimension_semantics = [#tpu.dimension_semantics<parallel>, #tpu.dimension_semantics<parallel>, #tpu.dimension_semantics<parallel>], iteration_bounds = array<i64: 2, 1, 1>, scalar_prefetch = 0 : i64, scratch_operands = 0 : i64, tpu.core_type = #tpu.core_type<tc>, window_params = [{transform_indices = @transform_0, window_bounds = array<i64: 2, 8, 12>}, {transform_indices = @transform_1, window_bounds = array<i64: 12, 32>}, {transform_indices = @transform_2, window_bounds = array<i64: 1, 32>}, {transform_indices = @transform_3, window_bounds = array<i64: 8, 32>}, {transform_indices = @transform_4, window_bounds = array<i64: 8, 64>}]} {
    %c0 = arith.constant 0 : index
    %c0_0 = arith.constant 0 : index
    %c0_1 = arith.constant 0 : index
    %0 = vector.load %arg3[%c0, %c0_0, %c0_1] : memref<2x8x12xf32, #tpu.memory_space<vmem>>, vector<1x8x12xf32>
    %1 = vector.shape_cast %0 : vector<1x8x12xf32> to vector<8x12xf32>
    %c0_2 = arith.constant 0 : index
    %c0_3 = arith.constant 0 : index
    %2 = vector.load %arg4[%c0_2, %c0_3] : memref<12x32xf32, #tpu.memory_space<vmem>>, vector<12x32xf32>
    %cst = arith.constant dense<0.000000e+00> : vector<8x32xf32>
    %3 = tpu.matmul %1, %2, %cst {dimension_numbers = #tpu.dot_dimension_numbers<[1], [0], [0], [1], [0, 0, 1, 1], [], []>} : vector<8x12xf32>, vector<12x32xf32>, vector<8x32xf32> -> vector<8x32xf32>
    %c0_4 = arith.constant 0 : index
    %c0_5 = arith.constant 0 : index
    %4 = vector.load %arg5[%c0_4, %c0_5] : memref<1x32xf32, #tpu.memory_space<vmem>>, vector<1x32xf32>
    %5 = vector.broadcast %4 : vector<1x32xf32> to vector<8x32xf32>
    %6 = arith.addf %3, %5 : vector<8x32xf32>
    %cst_6 = arith.constant 0.000000e+00 : f32
    %7 = vector.broadcast %cst_6 : f32 to vector<8x32xf32>
    %8 = arith.maximumf %6, %7 : vector<8x32xf32>
    %c0_7 = arith.constant 0 : index
    %c0_8 = arith.constant 0 : index
    %9 = vector.load %arg6[%c0_7, %c0_8] : memref<8x32xf32, #tpu.memory_space<vmem>>, vector<8x32xf32>
    %10 = arith.addf %8, %9 : vector<8x32xf32>
    %c0_9 = arith.constant 0 : index
    %c0_10 = arith.constant 0 : index
    %11 = vector.load %arg7[%c0_9, %c0_10] : memref<8x64xf32, #tpu.memory_space<vmem>>, vector<8x32xf32>
    tpu.vector_store %arg7[%c0_9, %c0_10], %10 {strides = array<i32>} : memref<8x64xf32, #tpu.memory_space<vmem>>, vector<8x32xf32>,
    %c1 = arith.constant 1 : index
    %c0_11 = arith.constant 0 : index
    %c0_12 = arith.constant 0 : index
    %12 = vector.load %arg3[%c1, %c0_11, %c0_12] : memref<2x8x12xf32, #tpu.memory_space<vmem>>, vector<1x8x12xf32>
    %13 = vector.shape_cast %12 : vector<1x8x12xf32> to vector<8x12xf32>
    %c0_13 = arith.constant 0 : index
    %c0_14 = arith.constant 0 : index
    %14 = vector.load %arg4[%c0_13, %c0_14] : memref<12x32xf32, #tpu.memory_space<vmem>>, vector<12x32xf32>
    %cst_15 = arith.constant dense<0.000000e+00> : vector<8x32xf32>
    %15 = tpu.matmul %13, %14, %cst_15 {dimension_numbers = #tpu.dot_dimension_numbers<[1], [0], [0], [1], [0, 0, 1, 1], [], []>} : vector<8x12xf32>, vector<12x32xf32>, vector<8x32xf32> -> vector<8x32xf32>
    %c0_16 = arith.constant 0 : index
    %c0_17 = arith.constant 0 : index
    %16 = vector.load %arg5[%c0_16, %c0_17] : memref<1x32xf32, #tpu.memory_space<vmem>>, vector<1x32xf32>
    %17 = vector.broadcast %16 : vector<1x32xf32> to vector<8x32xf32>
    %18 = arith.addf %15, %17 : vector<8x32xf32>
    %cst_18 = arith.constant 0.000000e+00 : f32
    %19 = vector.broadcast %cst_18 : f32 to vector<8x32xf32>
    %20 = arith.maximumf %18, %19 : vector<8x32xf32>
    %c0_19 = arith.constant 0 : index
    %c0_20 = arith.constant 0 : index
    %21 = vector.load %arg6[%c0_19, %c0_20] : memref<8x32xf32, #tpu.memory_space<vmem>>, vector<8x32xf32>
    %22 = arith.addf %20, %21 : vector<8x32xf32>
    %c0_21 = arith.constant 0 : index
    %c32 = arith.constant 32 : index
    %23 = vector.load %arg7[%c0_21, %c32] : memref<8x64xf32, #tpu.memory_space<vmem>>, vector<8x32xf32>
    tpu.vector_store %arg7[%c0_21, %c32], %22 {strides = array<i32>} : memref<8x64xf32, #tpu.memory_space<vmem>>, vector<8x32xf32>,
    return
  }
  func.func @transform_0(%arg0: i32, %arg1: i32, %arg2: i32) -> (i32, i32, i32) {
    %c0_i32 = arith.constant 0 : i32
    %c0_i32_0 = arith.constant 0 : i32
    return %arg2, %arg0, %c0_i32 : i32, i32, i32
  }
  func.func @transform_1(%arg0: i32, %arg1: i32, %arg2: i32) -> (i32, i32) {
    %c0_i32 = arith.constant 0 : i32
    %c0_i32_0 = arith.constant 0 : i32
    return %c0_i32, %arg1 : i32, i32
  }
  func.func @transform_2(%arg0: i32, %arg1: i32, %arg2: i32) -> (i32, i32) {
    %c0_i32 = arith.constant 0 : i32
    %c0_i32_0 = arith.constant 0 : i32
    return %c0_i32, %arg1 : i32, i32
  }
  func.func @transform_3(%arg0: i32, %arg1: i32, %arg2: i32) -> (i32, i32) {
    %c0_i32 = arith.constant 0 : i32
    return %arg0, %arg1 : i32, i32
  }
  func.func @transform_4(%arg0: i32, %arg1: i32, %arg2: i32) -> (i32, i32) {
    %c1_i32 = arith.constant 1 : i32
    %0 = arith.muli %arg2, %c1_i32 : i32
    %1 = arith.addi %0, %arg1 : i32
    %c0_i32 = arith.constant 0 : i32
    return %arg0, %1 : i32, i32
  }
}

</mosaic_0001>

<bundles_post_ra>
// kernel: tpu_custom_call.1
= control target key start
LH: loop header
LB: loop body
LE: loop exit
PB: predicated region body
PF: predicated region fallthrough
CT: control target
= control target key end

     0   :  { %9 = vsyncpa [#allocation4], 0  ;;  %s859_s0 = inlined_call_operand.vmem [shape: f32[2,16,12], index: 0, kind: input, shape index: {}]   ;;  %s860_s1 = inlined_call_operand.vmem [shape: f32[12,32], index: 1, kind: input, shape index: {}]   ;;  %s861_s2 = inlined_call_operand.vmem [shape: f32[1,32], index: 2, kind: input, shape index: {}]   ;;  %s862_s3 = inlined_call_operand.vmem [shape: f32[16,32], index: 3, kind: input, shape index: {}]   ;;  %s863_s4 = inlined_call_operand.hbm [shape: f32[16,64], index: 4, kind: output, shape index: {}]  }
   0x1   :  { %11 = vsyncpa [#allocation4 + $0x1], 0  ;;  %s732_s15 = smov 0   ;;  %s734_s16 = smov 0  }
   0x2   :  { %s736_s17 = smov 0   ;;  %s738_s18 = smov 0  }
   0x3   :  { %s740_s19 = smov 0   ;;  %s742_s20 = smov 0  }
   0x4 LB: > { %s547_s21 = sadd.s32 4294967295, %s704_s20   ;;  %s548_s22 = sadd.s32 4294967294, %s704_s20   ;;  %s704_s20 = sphi %s742_s20, %s17_s20   ;;  %s700_s19 = sphi %s740_s19, %s870_s19   ;;  %s696_s18 = sphi %s738_s18, %s869_s18   ;;  %s692_s17 = sphi %s736_s17, %s868_s17   ;;  %s688_s16 = sphi %s734_s16, %s867_s16   ;;  %s684_s15 = sphi %s732_s15, %s866_s15  }
   0x5   : > { %s36_s23 = sadd.s32 1, %s700_s19  ;;  %s45_s24 = sadd.s32 1, %s692_s17 }
   0x6   : > { %p38_p0 = scmp.ge.s32.totalorder %s36_s23, 2  ;;  %p52_p1 = scmp.ne.s32.totalorder %s692_s17, %s688_s16 }
   0x7   : > { %p53_p2 = scmp.eq.s32.totalorder %s704_s20, 0  ;;  %p166_p3 = scmp.eq.s32.totalorder %s547_s21, 1 }
   0x8   : > { %s872_s23 = smov (%p38_p0, %s36_s23), 0  ;;  %p171_p6 = scmp.ne.s32.totalorder %s688_s16, %s684_s15 }
   0x9   : > { %p54_p4 = por %p53_p2, %p52_p1  ;;  %p771_p5 = por %p166_p3, %p52_p1 }
   0xa   : > { %s41_s26 = ssub.s32 %s700_s19, %s872_s23  ;;  %p172_p8 = scmp.eq.s32.totalorder %s548_s22, 1 }
   0xb   : > { %p43_p7 = scmp.eq.s32.totalorder %s41_s26, 0  ;;  %p552_p10 = scmp.ge.s32.totalorder %s704_s20, 2 }
   0xc   : > { %p782_p9 = por %p172_p8, %p171_p6 }
   0xd   : > { %s780_s27 = scalar_select %p43_p7, %s692_s17, %s45_s24  }
   0xe   : > { %201 = sbr.rel (%p552_p10) target bundleno = 25 (0x19), region = 24 }
  0x13   : > { %204 = sbr.rel (!%p54_p4) target bundleno = 25 (0x19), region = 28  ;;  %s206_s29 = sand.u32 (%p54_p4), 1, %s692_s17  }
  0x14   : > { %s554_s30 = sshll.u32 (%p54_p4), %s700_s19, 3  ;;  %s553_s5 = sshll.u32 (%p54_p4), %s206_s29, 4 }
  0x15   : > { %s213_s8 = scalar_lea.vmem (%p54_p4), %s859_s0, %s554_s30  ;;  %s208_s9 = scalar_lea.vmem (%p54_p4), [#allocation2], %s553_s5 }
  0x16   : > { %v244_v0 = vld [vmem:[%s213_s8] sm:$0xff] (%p54_p4)  ;;  %v246_v1 = vld [vmem:[%s213_s8 + $0x10] sm:$0xff] (%p54_p4) }
  0x17   : > { %245 = vst [vmem:[%s208_s9] sm:$0xff] (%p54_p4), %v244_v0 }
  0x18   : > { %247 = vst [vmem:[%s208_s9 + $0x8] sm:$0xff] %v246_v1 }
  0x19 PF: > { %p555_p11 = scmp.ge.s32.totalorder %s704_s20, 1  ;;  %p262_p12 = scmp.lt.s32.totalorder %s704_s20, 3 }
  0x1b   : > { %p263_p13 = pnand %p555_p11, %p262_p12 }
  0x1c   : > { %s803_s14 = sand.u32 (!%p263_p13), 1, %s688_s16   ;;  %p316_p0 = scmp.lt.s32.totalorder (!%p263_p13), %s696_s18, 1 }
  0x1d   : > { %266 = sbr.rel (%p263_p13) target bundleno = 288 (0x120), region = 70  ;;  %s556_s21 = sshll.u32 (!%p263_p13), %s803_s14, 4 }
  0x1e   : > { %s271_s26 = scalar_lea.vmem (!%p263_p13), [#allocation2], %s556_s21  ;;  %s706_s10 = smov (!%p263_p13), 32  }
  0x1f   : > { %s557_s13 = sshll.u32 (!%p263_p13), %s803_s14, 3  ;;  %s565_s22 = sshll.u32 (!%p263_p13), %s696_s18, 3 }
  0x20   : > { %s307_s21 = scalar_lea.vmem (!%p263_p13), [#allocation3], %s557_s13  ;;  %s408_s6 = scalar_lea.sflag (!%p263_p13), [#allocation4], %s803_s14 }
  0x22   : > { %vm335_vm0 = vcmask 1043456   ;;  %v367_v2 = vld [vmem:[%s860_s1 + $0x8] sm:$0xf]  ;;  %v366_v3 = vld [vmem:[%s860_s1] sm:$0xff]  ;;  %vm331_vm1 = vcmask 97280   ;;  %s317_s29 = scalar_select %p316_p0, %s696_s18, 1 }
  0x23   : > { %562 = vmatpush.msk.msra.mxu1 %vm335_vm0, %v367_v2  ;;  %v326_v4 = vld [vmem:[%s860_s1 + $0x8] sm:$0xf]  ;;  %v324_v6 = vld [vmem:[%s271_s26] sm:$0xff]  ;;  %vm362_vm2 = vcmask 261120   ;;  %vm405_vm3 = vcmask 523520  }
  0x24   : > { %559 = vmatpush.msk.msra.mxu0 %vm335_vm0, %v326_v4  ;;  %v561_v5 = vld [vmem:[%s271_s26 + $0x8] sm:$0xff]  ;;  %s558_s30 = sshll.u32 %s317_s29, 3  ;;  %v624_v7 = vld [vmem:[%s861_s2] ss:$0 sm:$0xff]  ;;  %s420_s29 = scalar_lea.hbm %s863_s4, %s565_s22 }
  0x25   : > { %393 = vmatpush.msra.mxu1 %v366_v3  ;;  %s322_s9 = scalar_lea.vmem %s862_s3, %s558_s30  ;;  %v625_v13 = vld [vmem:[%s861_s2] ss:$0 sm:$0xff]  ;;  %s422_s30 = sshll.u32 %s307_s21, 4  ;;  %s423_s30 = int_to_ptr.vmem [resolvable:$true] %s422_s30 }
  0x26   : > { %563 = vmatmul.msk.f32.vlgmr.msra.gmra.mxu1 %vm331_vm1, %v561_v5  ;;  %354 = vmatpush.msra.mxu0 %v366_v3  ;;  %v399_v10 = vld [vmem:[%s322_s9] sm:$0xff]  ;;  %s424_s5 = sshll.u32 %s420_s29, 4  ;;  %s425_s5 = int_to_ptr.hbm [resolvable:$true] %s424_s5 }
  0x27   : > { %560 = vmatmul.msk.f32.vlgmr.msra.gmra.mxu0 %vm331_vm1, %v324_v6  ;;  %s640_s7 = sshra.s32 %s425_s5, 4  ;;  %s641_s7 = int_to_ptr.hbm [resolvable:$true] %s640_s7 }
  0x28   : > { %s642_s8 = scalar_lea.hbm %s641_s7, 8  ;;  %p647_p4 = scmp.lt.s32.totalorder %s641_s7, %s863_s4 }
  0x29   : > { %p643_p1 = scmp.ne.s32.totalorder %s641_s7, %s642_s8 }
  0x2b   : > { %p644_p2 = pnand %p643_p1, %p771_p5 }
  0x2d   : > { %p645_p3 = pneg %p644_p2 }
  0xa3   : > { %v395_v8 = vpop.f32.mrf.mxu1 }
  0xa4   : > { %v396_v9 = vadd.f32 %v624_v7, %v395_v8  ;;  %v356_v14 = vpop.f32.mrf.mxu0 }
  0xa5   : > { %v357_v15 = vadd.f32 %v625_v13, %v356_v14 }
  0xa6   : > { %v398_v11 = vmax.f32 %v396_v9, 0.0 }
  0xa7   : > { %v359_v16 = vmax.f32 %v357_v15, 0.0 }
  0xa8   : > { %v400_v12 = vadd.f32 %v399_v10, %v398_v11 }
  0xa9   : > { %v361_v17 = vadd.f32 %v399_v10, %v359_v16 }
  0xaa   : > { %402 = vrot.lane.b32.xlu0 %v400_v12, %s706_s10  ;;  %s646_s10 = scalar_lea.hbm %s863_s4, 16 }
  0xab   : > { %363 = vst.msk [vmem:[%s307_s21] sm:$0xff] %vm362_vm2, %v361_v17  ;;  %p648_p6 = scmp.lt.s32.totalorder %s646_s10, %s642_s8 }
  0xad   : > { %p649_p7 = por %p648_p6, %p647_p4 }
  0xaf   : > { %p650_p8 = pnand %p649_p7, %p645_p3 }
 0x11c   : > { %v403_v18 = vpop.permute.xlu0 %402 }
 0x11d   : > { %406 = vst.msk [vmem:[%s307_s21] sm:$0xff] %vm405_vm3, %v403_v18 }
 0x11e   : > { %653 = shalt.err (!%p650_p8)
}
 0x11f   : > { %568 = dma.vmem_to_hbm [thread:$0]  (%p771_p5), %s423_s30, 128, %s425_s5, %s408_s6  }
 0x120 PF: > { %s436_s14 = sand.u32 1, %s684_s15   ;;  %p571_p11 = pnand %p552_p10, %p782_p9 }
 0x121   : > { %s437_s13 = scalar_lea.sflag [#allocation4], %s436_s14 }
 0x122   : > { %p572_p12 = pneg %p571_p11 }
 0x124   : > { %679 = dma.done.wait (%p572_p12), %s437_s13, 128  }
 0x125   : > { %681 = vsyncadd (%p572_p12), %s437_s13, 4294967168  ;;  %s17_s20 = sadd.s32 1, %s704_s20   ;;  %s866_s15 = smov %s688_s16 }
 0x126   : > { %p14_p13 = scmp.ge.s32.totalorder %s17_s20, 4   ;;  %s867_s16 = smov %s692_s17 }
 0x127   : > { %s868_s17 = smov %s780_s27  ;;  %s869_s18 = smov %s700_s19 }
 0x128   : > { %s870_s19 = smov %s872_s23  ;;  %16 = sbr.rel (!%p14_p13) target bundleno = 4 (0x4), region = 124 }
 0x12d   :  { %443 = vsyncpa [#allocation4], 1 }
 0x12e   :  { %445 = vsyncpa [#allocation4 + $0x1], 1 }

</bundles_post_ra>
